<compile_context>
chip_gen: v7x
topology: tpu7x:2x2x1
jax: 0.10.0
libtpu: 0.0.40
codegen_flags: <defaults>
</compile_context>

<pallas_src>
import jax
import jax.numpy as jnp
import numpy as np
from jax.experimental import pallas as pl
from jax.experimental.pallas import tpu as pltpu


_NEG = -1e30  # plain Python float: jnp scalars at module scope get captured as kernel constants.


def _attention_mb_ssl_kernel(n_ref,                                   # scalar prefetch: [N] in SMEM
                             x_ref, idx_ref, wc_ref, bc_ref, wa2_ref, ba2_ref,
                             wp_ref, bp_ref,
                             m_ref, proj_ref,
                             mmax_sc, lsum_sc, acc_sc):
    k = pl.program_id(0)
    B, D = acc_sc.shape
    tN = x_ref.shape[0]

    @pl.when(k == 0)
    def _init():
        mmax_sc[...] = jnp.full(mmax_sc.shape, _NEG, mmax_sc.dtype)
        lsum_sc[...] = jnp.zeros(lsum_sc.shape, lsum_sc.dtype)
        acc_sc[...] = jnp.zeros(acc_sc.shape, acc_sc.dtype)

    n_total = n_ref[0]
    base = k * tN

    # feature_extractor (eval-mode Dropout == identity) fused with attention layer 1.
    # TODO(synk): training-mode Dropout is stochastic; eval-mode identity is used here.
    x = x_ref[...]                                                                   # (tN, L)
    hz = jnp.dot(x, wc_ref[...], preferred_element_type=jnp.float32) + bc_ref[...]   # (tN, D+F)

    # Tail-row validity: the boundary block (N % tile_n != 0) holds undefined data past row N;
    # those rows are zeroed in h so 0 * garbage can never poison the p @ h accumulation.
    row_valid = (jax.lax.broadcasted_iota(jnp.int32, (tN, 1), 0) + base) < n_total   # (tN, 1)
    h = jnp.where(row_valid, hz[:, :D], 0.0)                                         # (tN, D)
    a1 = jnp.tanh(hz[:, D:])                                                         # (tN, F)

    # attention layer 2 (K = 1): contract F of both operands (A @ B^T form) so per-instance
    # scores land lane-major as (1, tN) without a transpose.
    a_row = jax.lax.dot_general(wa2_ref[...], a1, (((1,), (1,)), ((), ())),
                                preferred_element_type=jnp.float32) + ba2_ref[...]   # (1, tN)

    # bag-membership mask (lane-dense (B, tN)) ANDed with tail-column validity, built in-kernel.
    idx = idx_ref[...]                                                               # (1, tN) int32
    bag = jax.lax.broadcasted_iota(jnp.int32, (B, tN), 0)                            # (B, tN)
    lane_valid = (jax.lax.broadcasted_iota(jnp.int32, (B, tN), 1) + base) < n_total  # (B, tN)
    mask = (bag == idx) & lane_valid                                                 # (B, tN)
    mask_f = mask.astype(jnp.float32)
    scores = jnp.where(mask, a_row, _NEG)                                            # (B, tN)

    # online (flash-style) per-bag softmax accumulation.
    m_prev = mmax_sc[...]                                                            # (B, 1)
    m_new = jnp.maximum(m_prev, jnp.max(scores, axis=-1, keepdims=True))             # (B, 1)
    corr = jnp.exp(m_prev - m_new)                                                   # (B, 1)
    # NOTE: the `* mask_f` is load-bearing: for a bag with no member seen yet, m_new == -1e30 and
    # exp(0) == 1 on every masked lane; the multiply zeroes those lanes out.
    p = jnp.exp(scores - m_new) * mask_f                                             # (B, tN)
    lsum_sc[...] = corr * lsum_sc[...] + jnp.sum(p, axis=-1, keepdims=True)
    acc_sc[...] = corr * acc_sc[...] + jnp.dot(p, h, preferred_element_type=jnp.float32)
    mmax_sc[...] = m_new

    @pl.when(k == pl.num_programs(0) - 1)
    def _finish():
        m_out = acc_sc[...] / lsum_sc[...]                                           # (B, D)
        m_ref[...] = m_out
        pvec = jnp.dot(m_out, wp_ref[...], preferred_element_type=jnp.float32) + bp_ref[...]  # (B, F)
        nrm = jnp.sqrt(jnp.sum(pvec * pvec, axis=-1, keepdims=True))
        proj_ref[...] = pvec / jnp.maximum(nrm, 1e-12)


def attention_mb_ssl_forward(x, idxs, params, *, max_tile_n=4096, bag_info=None):
    """x: (1, N, L) float32, idxs: (N,) int -- mirrors the PyTorch forward(x, idxs).

    bag_info: optional (inv, B) precomputed bag layout (np.unique inverse + number of bags) to
    hoist the data-dependent host sync out of hot loops when the same bag layout is reused.
    """
    x2 = jnp.squeeze(x, axis=0).astype(jnp.float32)                  # (N, L)
    N, L = x2.shape

    # Bag discovery on the host: B is data-dependent (like torch.unique), so output shapes need it.
    if bag_info is None:
        idxs_np = np.asarray(idxs)
        u, inv = np.unique(idxs_np, return_inverse=True)             # sorted, like torch.unique
        B = int(u.shape[0])
    else:
        inv, B = bag_info
        B = int(B)

    wfe, bfe = params["wfe"], params["bfe"]
    wa1, ba1 = params["wa1"], params["ba1"]
    wa2, ba2 = params["wa2"], params["ba2"]
    wp, bp = params["wp"], params["bp"]
    D = int(wfe.shape[1])
    Fdim = int(wa1.shape[1])

    # Fold attention layer 1 into the feature extractor: x @ [wfe | wfe@wa1] + [bfe | bfe@wa1+ba1].
    hi = jax.lax.Precision.HIGHEST
    wc = jnp.concatenate([wfe, jnp.dot(wfe, wa1, precision=hi)], axis=1)          # (L, D+F)
    bc = jnp.concatenate([bfe, jnp.dot(bfe, wa1, precision=hi) + ba1], axis=1)    # (1, D+F)
    wa2_row = jnp.transpose(wa2)                                                  # (1, F)

    # Instance tiling: big tiles so the DMA per step dwarfs the ~0.35 us per-step overhead,
    # capped so a double-buffered f32 x tile stays around 8 MiB per buffer.  No host-side pad
    # of x: the grid covers ceil(N / tile_n) blocks and the tail is masked in-kernel.
    max_tile_n = max(128, (int(max_tile_n) // 128) * 128)
    vmem_rows = max(128, ((8 * 1024 * 1024) // (4 * max(L, 1))) // 128 * 128)
    tile_n = min(max_tile_n, vmem_rows, ((N + 127) // 128) * 128)
    num_tiles = (N + tile_n - 1) // tile_n
    grid = (num_tiles,)

    idx_row = jnp.asarray(np.asarray(inv).reshape(1, -1), dtype=jnp.int32)        # (1, N)
    n_info = jnp.asarray([N], dtype=jnp.int32)                                    # scalar prefetch

    const = lambda k, n: (0, 0)
    in_specs = [
        pl.BlockSpec((tile_n, L), lambda k, n: (k, 0)),   # x tile (instance-major)
        pl.BlockSpec((1, tile_n), lambda k, n: (0, k)),   # bag ids for this tile
        pl.BlockSpec((L, D + Fdim), const),               # fused feature/attention-1 weight
        pl.BlockSpec((1, D + Fdim), const),               # fused bias
        pl.BlockSpec((1, Fdim), const),                   # attention layer-2 weight (row form)
        pl.BlockSpec((1, 1), const),                      # attention layer-2 bias
        pl.BlockSpec((D, Fdim), const),                   # projector weight
        pl.BlockSpec((1, Fdim), const),                   # projector bias
    ]
    out_specs = (
        pl.BlockSpec((B, D), const),
        pl.BlockSpec((B, Fdim), const),
    )
    scratch_shapes = [
        pltpu.VMEM((B, 1), jnp.float32),                  # running per-bag max
        pltpu.VMEM((B, 1), jnp.float32),                  # running per-bag softmax denom
        pltpu.VMEM((B, D), jnp.float32),                  # running per-bag weighted sum
    ]

    n_eff = num_tiles * tile_n
    flops = (2 * n_eff * L * (D + Fdim) + 2 * n_eff * Fdim + 2 * n_eff * B * D
             + 2 * B * D * Fdim + 6 * n_eff * B)
    transcendentals = n_eff * Fdim + n_eff * B + 2 * B
    bytes_accessed = 4 * (N * L + N + L * (D + Fdim) + (D + Fdim)
                          + 2 * Fdim + 1 + D * Fdim + B * D + B * Fdim)

    M, proj = pl.pallas_call(
        _attention_mb_ssl_kernel,
        out_shape=(jax.ShapeDtypeStruct((B, D), jnp.float32),
                   jax.ShapeDtypeStruct((B, Fdim), jnp.float32)),
        grid_spec=pltpu.PrefetchScalarGridSpec(
            num_scalar_prefetch=1,
            grid=grid,
            in_specs=in_specs,
            out_specs=out_specs,
            scratch_shapes=scratch_shapes),
        compiler_params=pltpu.CompilerParams(
            dimension_semantics=("arbitrary",),           # N is the reduction axis (resident acc)
            vmem_limit_bytes=32 * 1024 * 1024),
        cost_estimate=pl.CostEstimate(flops=int(flops),
                                      transcendentals=int(transcendentals),
                                      bytes_accessed=int(bytes_accessed)),
    )(n_info, x2, idx_row, wc, bc, wa2_row, ba2, wp, bp)
    return M, proj


def reference_forward(x, idxs, params):
    """Pure numpy replica of the PyTorch forward (eval-mode dropout)."""
    x = np.asarray(jnp.squeeze(x, axis=0), dtype=np.float32)
    idxs = np.asarray(idxs)
    u = np.unique(idxs)
    H = x @ np.asarray(params["wfe"]) + np.asarray(params["bfe"])
    A = np.tanh(H @ np.asarray(params["wa1"]) + np.asarray(params["ba1"]))
    A = (A @ np.asarray(params["wa2"]) + np.asarray(params["ba2"])).T        # (1, N)
    M = np.zeros((len(u), H.shape[1]), dtype=np.float32)
    for a_idx, i in enumerate(u):
        these = np.nonzero(idxs == i)[0]
        s = A[:, these]
        s = np.exp(s - s.max(axis=1, keepdims=True))
        s = s / s.sum(axis=1, keepdims=True)
        M[a_idx, :] = s @ H[these, :]
    proj = M @ np.asarray(params["wp"]) + np.asarray(params["bp"])
    proj = proj / np.maximum(np.linalg.norm(proj, axis=1, keepdims=True), 1e-12)
    return M, proj


def init_params(key, nf):
    L = int(nf)
    D = L // 4
    Fdim = D // 8
    K = 1

    def linear(kw, kb, fan_in, fan_out):
        bound = 1.0 / np.sqrt(fan_in)
        w = jax.random.uniform(kw, (fan_in, fan_out), jnp.float32, -bound, bound)
        b = jax.random.uniform(kb, (1, fan_out), jnp.float32, -bound, bound)
        return w, b

    k = jax.random.split(key, 8)
    wfe, bfe = linear(k[0], k[1], L, D)           # feature_extractor Linear(L, D)
    wa1, ba1 = linear(k[2], k[3], D, Fdim)        # attention Linear(D, F)
    wa2, ba2 = linear(k[4], k[5], Fdim, K)        # attention Linear(F, K)
    wp, bp = linear(k[6], k[7], D * K, Fdim)      # projector Linear(D*K, F)
    return {"wfe": wfe, "bfe": bfe, "wa1": wa1, "ba1": ba1,
            "wa2": wa2, "ba2": ba2, "wp": wp, "bp": bp}


if __name__ == "__main__":
    nf = 128                      # L = 128 -> D = 32, F = 4, K = 1
    key = jax.random.PRNGKey(0)
    kx, ki, kp, kx2 = jax.random.split(key, 4)
    params = init_params(kp, nf)

    # Case 1: multi-tile path (grid of 3, partial tail block masked in-kernel) with 3 bags.
    N = 300
    x = jax.random.normal(kx, (1, N, nf), dtype=jnp.float32)
    idxs = jax.random.randint(ki, (N,), 0, 3, dtype=jnp.int32)
    M, proj = attention_mb_ssl_forward(x, idxs, params, max_tile_n=128)
    jax.block_until_ready((M, proj))
    M_ref, proj_ref = reference_forward(x, idxs, params)
    np.testing.assert_allclose(np.asarray(M), M_ref, rtol=1e-3, atol=1e-4)
    np.testing.assert_allclose(np.asarray(proj), proj_ref, rtol=1e-3, atol=1e-4)

    # Case 2: single-tile path (init and finalize on the same grid step, heavy tail masking)
    # with explicit bags and the default (large) tile size.
    N2 = 16
    x2 = jax.random.normal(kx2, (1, N2, nf), dtype=jnp.float32)
    idxs2 = jnp.asarray(np.array([0, 0, 0, 0, 1, 1, 1, 1, 1, 2, 2, 2, 2, 0, 1, 2],
                                 dtype=np.int32))
    M2, proj2 = attention_mb_ssl_forward(x2, idxs2, params)
    jax.block_until_ready((M2, proj2))
    M2_ref, proj2_ref = reference_forward(x2, idxs2, params)
    np.testing.assert_allclose(np.asarray(M2), M2_ref, rtol=1e-3, atol=1e-4)
    np.testing.assert_allclose(np.asarray(proj2), proj2_ref, rtol=1e-3, atol=1e-4)

    print("KERNEL_OK")
</pallas_src>

<mosaic_0001>
module attributes {stable_mosaic.version = 11 : i64} {
  func.func @_attention_mb_ssl_kernel(%arg0: i32, %arg1: memref<1xi32, #tpu.memory_space<smem>>, %arg2: memref<128x128xf32, #tpu.memory_space<vmem>>, %arg3: memref<1x128xi32, #tpu.memory_space<vmem>>, %arg4: memref<128x36xf32, #tpu.memory_space<vmem>>, %arg5: memref<1x36xf32, #tpu.memory_space<vmem>>, %arg6: memref<1x4xf32, #tpu.memory_space<vmem>>, %arg7: memref<1x1xf32, #tpu.memory_space<vmem>>, %arg8: memref<32x4xf32, #tpu.memory_space<vmem>>, %arg9: memref<1x4xf32, #tpu.memory_space<vmem>>, %arg10: memref<3x32xf32, #tpu.memory_space<vmem>>, %arg11: memref<3x4xf32, #tpu.memory_space<vmem>>, %arg12: memref<3x1xf32, #tpu.memory_space<vmem>>, %arg13: memref<3x1xf32, #tpu.memory_space<vmem>>, %arg14: memref<3x32xf32, #tpu.memory_space<vmem>>) attributes {dimension_semantics = [#tpu.dimension_semantics<arbitrary>], iteration_bounds = array<i64: 3>, scalar_prefetch = 1 : i64, scratch_operands = 3 : i64, tpu.core_type = #tpu.core_type<tc>, window_params = [{transform_indices = @transform_0, window_bounds = array<i64: 128, 128>}, {transform_indices = @transform_1, window_bounds = array<i64: 1, 128>}, {pipeline_mode = #tpu.pipeline_mode<synchronous>, transform_indices = @transform_2, window_bounds = array<i64: 128, 36>}, {pipeline_mode = #tpu.pipeline_mode<synchronous>, transform_indices = @transform_3, window_bounds = array<i64: 1, 36>}, {pipeline_mode = #tpu.pipeline_mode<synchronous>, transform_indices = @transform_4, window_bounds = array<i64: 1, 4>}, {pipeline_mode = #tpu.pipeline_mode<synchronous>, transform_indices = @transform_5, window_bounds = array<i64: 1, 1>}, {pipeline_mode = #tpu.pipeline_mode<synchronous>, transform_indices = @transform_6, window_bounds = array<i64: 32, 4>}, {pipeline_mode = #tpu.pipeline_mode<synchronous>, transform_indices = @transform_7, window_bounds = array<i64: 1, 4>}, {pipeline_mode = #tpu.pipeline_mode<synchronous>, transform_indices = @transform_8, window_bounds = array<i64: 3, 32>}, {pipeline_mode = #tpu.pipeline_mode<synchronous>, transform_indices = @transform_9, window_bounds = array<i64: 3, 4>}]} {
    %c0_i32 = arith.constant 0 : i32
    %0 = arith.cmpi eq, %arg0, %c0_i32 : i32
    %1 = arith.extui %0 : i1 to i32
    %c0_i32_0 = arith.constant 0 : i32
    %2 = arith.cmpi ne, %1, %c0_i32_0 : i32
    scf.if %2 {
      %cst_32 = arith.constant -1.000000e+30 : f32
      %70 = vector.broadcast %cst_32 : f32 to vector<3x1xf32>
      %c0_33 = arith.constant 0 : index
      %c0_34 = arith.constant 0 : index
      %71 = vector.load %arg12[%c0_33, %c0_34] : memref<3x1xf32, #tpu.memory_space<vmem>>, vector<3x1xf32>
      tpu.vector_store %arg12[%c0_33, %c0_34], %70 {strides = array<i32>} : memref<3x1xf32, #tpu.memory_space<vmem>>, vector<3x1xf32>,
      %cst_35 = arith.constant 0.000000e+00 : f32
      %72 = vector.broadcast %cst_35 : f32 to vector<3x1xf32>
      %c0_36 = arith.constant 0 : index
      %c0_37 = arith.constant 0 : index
      %73 = vector.load %arg13[%c0_36, %c0_37] : memref<3x1xf32, #tpu.memory_space<vmem>>, vector<3x1xf32>
      tpu.vector_store %arg13[%c0_36, %c0_37], %72 {strides = array<i32>} : memref<3x1xf32, #tpu.memory_space<vmem>>, vector<3x1xf32>,
      %cst_38 = arith.constant 0.000000e+00 : f32
      %74 = vector.broadcast %cst_38 : f32 to vector<3x32xf32>
      %c0_39 = arith.constant 0 : index
      %c0_40 = arith.constant 0 : index
      %75 = vector.load %arg14[%c0_39, %c0_40] : memref<3x32xf32, #tpu.memory_space<vmem>>, vector<3x32xf32>
      tpu.vector_store %arg14[%c0_39, %c0_40], %74 {strides = array<i32>} : memref<3x32xf32, #tpu.memory_space<vmem>>, vector<3x32xf32>,
    } else {
    }
    %c0 = arith.constant 0 : index
    %3 = memref.load %arg1[%c0] : memref<1xi32, #tpu.memory_space<smem>>
    %c128_i32 = arith.constant 128 : i32
    %4 = arith.muli %arg0, %c128_i32 : i32
    %c0_1 = arith.constant 0 : index
    %c0_2 = arith.constant 0 : index
    %5 = vector.load %arg2[%c0_1, %c0_2] : memref<128x128xf32, #tpu.memory_space<vmem>>, vector<128x128xf32>
    %c0_3 = arith.constant 0 : index
    %c0_4 = arith.constant 0 : index
    %6 = vector.load %arg4[%c0_3, %c0_4] : memref<128x36xf32, #tpu.memory_space<vmem>>, vector<128x36xf32>
    %cst = arith.constant dense<0.000000e+00> : vector<128x36xf32>
    %7 = tpu.matmul %5, %6, %cst {dimension_numbers = #tpu.dot_dimension_numbers<[1], [0], [0], [1], [0, 0, 1, 1], [], []>} : vector<128x128xf32>, vector<128x36xf32>, vector<128x36xf32> -> vector<128x36xf32>
    %c0_5 = arith.constant 0 : index
    %c0_6 = arith.constant 0 : index
    %8 = vector.load %arg5[%c0_5, %c0_6] : memref<1x36xf32, #tpu.memory_space<vmem>>, vector<1x36xf32>
    %9 = vector.broadcast %8 : vector<1x36xf32> to vector<128x36xf32>
    %10 = arith.addf %7, %9 : vector<128x36xf32>
    %11 = tpu.iota {dimensions = array<i32: 0>} : vector<128x1xi32>
    %12 = vector.broadcast %4 : i32 to vector<128x1xi32>
    %13 = arith.addi %11, %12 : vector<128x1xi32>
    %14 = vector.broadcast %3 : i32 to vector<128x1xi32>
    %15 = arith.cmpi slt, %13, %14 : vector<128x1xi32>
    %16 = vector.extract_strided_slice %10 {offsets = [0, 0], sizes = [128, 32], strides = [1, 1]} : vector<128x36xf32> to vector<128x32xf32>
    %cst_7 = arith.constant 0.000000e+00 : f32
    %17 = vector.shape_cast %15 : vector<128x1xi1> to vector<128x1xi1>
    %18 = vector.broadcast %17 : vector<128x1xi1> to vector<128x32xi1>
    %19 = vector.broadcast %cst_7 : f32 to vector<128x32xf32>
    %20 = arith.select %18, %16, %19 : vector<128x32xi1>, vector<128x32xf32>
    %21 = vector.extract_strided_slice %10 {offsets = [0, 32], sizes = [128, 4], strides = [1, 1]} : vector<128x36xf32> to vector<128x4xf32>
    %22 = math.tanh %21 : vector<128x4xf32>
    %c0_8 = arith.constant 0 : index
    %c0_9 = arith.constant 0 : index
    %23 = vector.load %arg6[%c0_8, %c0_9] : memref<1x4xf32, #tpu.memory_space<vmem>>, vector<1x4xf32>
    %cst_10 = arith.constant dense<0.000000e+00> : vector<1x128xf32>
    %24 = tpu.matmul %23, %22, %cst_10 {dimension_numbers = #tpu.dot_dimension_numbers<[1], [1], [0], [0], [0, 0, 1, 0], [], []>} : vector<1x4xf32>, vector<128x4xf32>, vector<1x128xf32> -> vector<1x128xf32>
    %c0_11 = arith.constant 0 : index
    %c0_12 = arith.constant 0 : index
    %25 = vector.load %arg7[%c0_11, %c0_12] : memref<1x1xf32, #tpu.memory_space<vmem>>, vector<1x1xf32>
    %26 = vector.broadcast %25 : vector<1x1xf32> to vector<1x128xf32>
    %27 = arith.addf %24, %26 : vector<1x128xf32>
    %c0_13 = arith.constant 0 : index
    %c0_14 = arith.constant 0 : index
    %28 = vector.load %arg3[%c0_13, %c0_14] : memref<1x128xi32, #tpu.memory_space<vmem>>, vector<1x128xi32>
    %29 = tpu.iota {dimensions = array<i32: 0>} : vector<3x128xi32>
    %30 = tpu.iota {dimensions = array<i32: 1>} : vector<3x128xi32>
    %31 = vector.broadcast %4 : i32 to vector<3x128xi32>
    %32 = arith.addi %30, %31 : vector<3x128xi32>
    %33 = vector.broadcast %3 : i32 to vector<3x128xi32>
    %34 = arith.cmpi slt, %32, %33 : vector<3x128xi32>
    %35 = vector.broadcast %28 : vector<1x128xi32> to vector<3x128xi32>
    %36 = arith.cmpi eq, %29, %35 : vector<3x128xi32>
    %37 = arith.andi %36, %34 : vector<3x128xi1>
    %38 = arith.extui %37 : vector<3x128xi1> to vector<3x128xi32>
    %39 = arith.sitofp %38 : vector<3x128xi32> to vector<3x128xf32>
    %cst_15 = arith.constant -1.000000e+30 : f32
    %40 = vector.shape_cast %27 : vector<1x128xf32> to vector<1x128xf32>
    %41 = vector.broadcast %40 : vector<1x128xf32> to vector<3x128xf32>
    %42 = vector.broadcast %cst_15 : f32 to vector<3x128xf32>
    %43 = arith.select %37, %41, %42 : vector<3x128xi1>, vector<3x128xf32>
    %c0_16 = arith.constant 0 : index
    %c0_17 = arith.constant 0 : index
    %44 = vector.load %arg12[%c0_16, %c0_17] : memref<3x1xf32, #tpu.memory_space<vmem>>, vector<3x1xf32>
    %cst_18 = arith.constant dense<0xFF800000> : vector<3xf32>
    %45 = vector.multi_reduction <maximumf>, %43, %cst_18 [1] : vector<3x128xf32> to vector<3xf32>
    %46 = vector.shape_cast %45 : vector<3xf32> to vector<3x1xf32>
    %47 = arith.maximumf %44, %46 : vector<3x1xf32>
    %48 = arith.subf %44, %47 : vector<3x1xf32>
    %49 = math.exp %48 : vector<3x1xf32>
    %50 = vector.broadcast %47 : vector<3x1xf32> to vector<3x128xf32>
    %51 = arith.subf %43, %50 : vector<3x128xf32>
    %52 = math.exp %51 : vector<3x128xf32>
    %53 = arith.mulf %52, %39 : vector<3x128xf32>
    %c0_19 = arith.constant 0 : index
    %c0_20 = arith.constant 0 : index
    %54 = vector.load %arg13[%c0_19, %c0_20] : memref<3x1xf32, #tpu.memory_space<vmem>>, vector<3x1xf32>
    %55 = arith.mulf %49, %54 : vector<3x1xf32>
    %cst_21 = arith.constant dense<0.000000e+00> : vector<3xf32>
    %56 = vector.multi_reduction <add>, %53, %cst_21 [1] : vector<3x128xf32> to vector<3xf32>
    %57 = vector.shape_cast %56 : vector<3xf32> to vector<3x1xf32>
    %58 = arith.addf %55, %57 : vector<3x1xf32>
    %c0_22 = arith.constant 0 : index
    %c0_23 = arith.constant 0 : index
    %59 = vector.load %arg13[%c0_22, %c0_23] : memref<3x1xf32, #tpu.memory_space<vmem>>, vector<3x1xf32>
    tpu.vector_store %arg13[%c0_22, %c0_23], %58 {strides = array<i32>} : memref<3x1xf32, #tpu.memory_space<vmem>>, vector<3x1xf32>,
    %c0_24 = arith.constant 0 : index
    %c0_25 = arith.constant 0 : index
    %60 = vector.load %arg14[%c0_24, %c0_25] : memref<3x32xf32, #tpu.memory_space<vmem>>, vector<3x32xf32>
    %61 = vector.broadcast %49 : vector<3x1xf32> to vector<3x32xf32>
    %62 = arith.mulf %61, %60 : vector<3x32xf32>
    %cst_26 = arith.constant dense<0.000000e+00> : vector<3x32xf32>
    %63 = tpu.matmul %53, %20, %cst_26 {dimension_numbers = #tpu.dot_dimension_numbers<[1], [0], [0], [1], [0, 0, 1, 1], [], []>} : vector<3x128xf32>, vector<128x32xf32>, vector<3x32xf32> -> vector<3x32xf32>
    %64 = arith.addf %62, %63 : vector<3x32xf32>
    %c0_27 = arith.constant 0 : index
    %c0_28 = arith.constant 0 : index
    %65 = vector.load %arg14[%c0_27, %c0_28] : memref<3x32xf32, #tpu.memory_space<vmem>>, vector<3x32xf32>
    tpu.vector_store %arg14[%c0_27, %c0_28], %64 {strides = array<i32>} : memref<3x32xf32, #tpu.memory_space<vmem>>, vector<3x32xf32>,
    %c0_29 = arith.constant 0 : index
    %c0_30 = arith.constant 0 : index
    %66 = vector.load %arg12[%c0_29, %c0_30] : memref<3x1xf32, #tpu.memory_space<vmem>>, vector<3x1xf32>
    tpu.vector_store %arg12[%c0_29, %c0_30], %47 {strides = array<i32>} : memref<3x1xf32, #tpu.memory_space<vmem>>, vector<3x1xf32>,
    %c2_i32 = arith.constant 2 : i32
    %67 = arith.cmpi eq, %arg0, %c2_i32 : i32
    %68 = arith.extui %67 : i1 to i32
    %c0_i32_31 = arith.constant 0 : i32
    %69 = arith.cmpi ne, %68, %c0_i32_31 : i32
    scf.if %69 {
      %c0_32 = arith.constant 0 : index
      %c0_33 = arith.constant 0 : index
      %70 = vector.load %arg14[%c0_32, %c0_33] : memref<3x32xf32, #tpu.memory_space<vmem>>, vector<3x32xf32>
      %c0_34 = arith.constant 0 : index
      %c0_35 = arith.constant 0 : index
      %71 = vector.load %arg13[%c0_34, %c0_35] : memref<3x1xf32, #tpu.memory_space<vmem>>, vector<3x1xf32>
      %72 = vector.broadcast %71 : vector<3x1xf32> to vector<3x32xf32>
      %73 = arith.divf %70, %72 : vector<3x32xf32>
      %c0_36 = arith.constant 0 : index
      %c0_37 = arith.constant 0 : index
      %74 = vector.load %arg10[%c0_36, %c0_37] : memref<3x32xf32, #tpu.memory_space<vmem>>, vector<3x32xf32>
      tpu.vector_store %arg10[%c0_36, %c0_37], %73 {strides = array<i32>} : memref<3x32xf32, #tpu.memory_space<vmem>>, vector<3x32xf32>,
      %c0_38 = arith.constant 0 : index
      %c0_39 = arith.constant 0 : index
      %75 = vector.load %arg8[%c0_38, %c0_39] : memref<32x4xf32, #tpu.memory_space<vmem>>, vector<32x4xf32>
      %cst_40 = arith.constant dense<0.000000e+00> : vector<3x4xf32>
      %76 = tpu.matmul %73, %75, %cst_40 {dimension_numbers = #tpu.dot_dimension_numbers<[1], [0], [0], [1], [0, 0, 1, 1], [], []>} : vector<3x32xf32>, vector<32x4xf32>, vector<3x4xf32> -> vector<3x4xf32>
      %c0_41 = arith.constant 0 : index
      %c0_42 = arith.constant 0 : index
      %77 = vector.load %arg9[%c0_41, %c0_42] : memref<1x4xf32, #tpu.memory_space<vmem>>, vector<1x4xf32>
      %78 = vector.broadcast %77 : vector<1x4xf32> to vector<3x4xf32>
      %79 = arith.addf %76, %78 : vector<3x4xf32>
      %80 = arith.mulf %79, %79 : vector<3x4xf32>
      %cst_43 = arith.constant dense<0.000000e+00> : vector<3xf32>
      %81 = vector.multi_reduction <add>, %80, %cst_43 [1] : vector<3x4xf32> to vector<3xf32>
      %82 = vector.shape_cast %81 : vector<3xf32> to vector<3x1xf32>
      %83 = math.sqrt %82 : vector<3x1xf32>
      %cst_44 = arith.constant 9.99999996E-13 : f32
      %84 = vector.broadcast %cst_44 : f32 to vector<3x1xf32>
      %85 = arith.maximumf %83, %84 : vector<3x1xf32>
      %86 = vector.broadcast %85 : vector<3x1xf32> to vector<3x4xf32>
      %87 = arith.divf %79, %86 : vector<3x4xf32>
      %c0_45 = arith.constant 0 : index
      %c0_46 = arith.constant 0 : index
      %88 = vector.load %arg11[%c0_45, %c0_46] : memref<3x4xf32, #tpu.memory_space<vmem>>, vector<3x4xf32>
      tpu.vector_store %arg11[%c0_45, %c0_46], %87 {strides = array<i32>} : memref<3x4xf32, #tpu.memory_space<vmem>>, vector<3x4xf32>,
    } else {
    }
    return
  }
  func.func @transform_0(%arg0: i32, %arg1: memref<1xi32, #tpu.memory_space<smem>>) -> (i32, i32) {
    %c0_i32 = arith.constant 0 : i32
    %c0_i32_0 = arith.constant 0 : i32
    return %arg0, %c0_i32 : i32, i32
  }
  func.func @transform_1(%arg0: i32, %arg1: memref<1xi32, #tpu.memory_space<smem>>) -> (i32, i32) {
    %c0_i32 = arith.constant 0 : i32
    %c0_i32_0 = arith.constant 0 : i32
    return %c0_i32, %arg0 : i32, i32
  }
  func.func @transform_2(%arg0: i32, %arg1: memref<1xi32, #tpu.memory_space<smem>>) -> (i32, i32) {
    %c0_i32 = arith.constant 0 : i32
    %c0_i32_0 = arith.constant 0 : i32
    %c0_i32_1 = arith.constant 0 : i32
    return %c0_i32, %c0_i32_0 : i32, i32
  }
  func.func @transform_3(%arg0: i32, %arg1: memref<1xi32, #tpu.memory_space<smem>>) -> (i32, i32) {
    %c0_i32 = arith.constant 0 : i32
    %c0_i32_0 = arith.constant 0 : i32
    %c0_i32_1 = arith.constant 0 : i32
    return %c0_i32, %c0_i32_0 : i32, i32
  }
  func.func @transform_4(%arg0: i32, %arg1: memref<1xi32, #tpu.memory_space<smem>>) -> (i32, i32) {
    %c0_i32 = arith.constant 0 : i32
    %c0_i32_0 = arith.constant 0 : i32
    %c0_i32_1 = arith.constant 0 : i32
    return %c0_i32, %c0_i32_0 : i32, i32
  }
  func.func @transform_5(%arg0: i32, %arg1: memref<1xi32, #tpu.memory_space<smem>>) -> (i32, i32) {
    %c0_i32 = arith.constant 0 : i32
    %c0_i32_0 = arith.constant 0 : i32
    %c0_i32_1 = arith.constant 0 : i32
    return %c0_i32, %c0_i32_0 : i32, i32
  }
  func.func @transform_6(%arg0: i32, %arg1: memref<1xi32, #tpu.memory_space<smem>>) -> (i32, i32) {
    %c0_i32 = arith.constant 0 : i32
    %c0_i32_0 = arith.constant 0 : i32
    %c0_i32_1 = arith.constant 0 : i32
    return %c0_i32, %c0_i32_0 : i32, i32
  }
  func.func @transform_7(%arg0: i32, %arg1: memref<1xi32, #tpu.memory_space<smem>>) -> (i32, i32) {
    %c0_i32 = arith.constant 0 : i32
    %c0_i32_0 = arith.constant 0 : i32
    %c0_i32_1 = arith.constant 0 : i32
    return %c0_i32, %c0_i32_0 : i32, i32
  }
  func.func @transform_8(%arg0: i32, %arg1: memref<1xi32, #tpu.memory_space<smem>>) -> (i32, i32) {
    %c0_i32 = arith.constant 0 : i32
    %c0_i32_0 = arith.constant 0 : i32
    %c0_i32_1 = arith.constant 0 : i32
    return %c0_i32, %c0_i32_0 : i32, i32
  }
  func.func @transform_9(%arg0: i32, %arg1: memref<1xi32, #tpu.memory_space<smem>>) -> (i32, i32) {
    %c0_i32 = arith.constant 0 : i32
    %c0_i32_0 = arith.constant 0 : i32
    %c0_i32_1 = arith.constant 0 : i32
    return %c0_i32, %c0_i32_0 : i32, i32
  }
}

</mosaic_0001>

<bundles_post_ra>
// kernel: tpu_custom_call.1
= control target key start
LH: loop header
LB: loop body
LE: loop exit
PB: predicated region body
PF: predicated region fallthrough
CT: control target
= control target key end

     0   :  { %s2298_s0 = inlined_call_operand.<no memory space> [shape: s32[1], index: 0, kind: input, shape index: {}]   ;;  %s2299_s1 = inlined_call_operand.hbm [shape: f32[300,128], index: 1, kind: input, shape index: {}]   ;;  %s2300_s2 = inlined_call_operand.vmem [shape: s32[1,300], index: 2, kind: input, shape index: {}]   ;;  %s2301_s3 = inlined_call_operand.vmem [shape: f32[128,36], index: 3, kind: input, shape index: {}]   ;;  %s2302_s4 = inlined_call_operand.vmem [shape: f32[1,36], index: 4, kind: input, shape index: {}]   ;;  %s2303_s5 = inlined_call_operand.vmem [shape: f32[1,4], index: 5, kind: input, shape index: {}]   ;;  %s2304_s6 = inlined_call_operand.<no memory space> [shape: f32[1,1], index: 6, kind: input, shape index: {}]   ;;  %s2305_s7 = inlined_call_operand.vmem [shape: f32[32,4], index: 7, kind: input, shape index: {}]   ;;  %s2306_s8 = inlined_call_operand.vmem [shape: f32[1,4], index: 8, kind: input, shape index: {}]   ;;  %s2307_s9 = inlined_call_operand.hbm [shape: f32[3,32], index: 9, kind: output, shape index: {0}]   ;;  %s2308_s10 = inlined_call_operand.hbm [shape: f32[3,4], index: 10, kind: output, shape index: {1}]  }
   0x1   :  { %16 = sst [smem:[#allocation6]] %s2298_s0  ;;  %v17_v0 = vstv %s2304_s6 }
   0x2   :  { %18 = vst [vmem:[#allocation7] sm:$0x1] %v17_v0 }
   0x3   :  { %19 = vsyncpa [#allocation9], 0 }
   0x4   :  { %21 = vsyncpa [#allocation9 + $0x1], 0 }
   0x5   :  { %22 = vsyncpa [#allocation10], 0 }
   0x6   :  { %23 = vsyncpa [#allocation13], 0  ;;  %s1886_s17 = smov 0   ;;  %s1888_s18 = smov 0  }
   0x7   :  { %s1890_s19 = smov 0   ;;  %s1892_s20 = smov 0  }
   0x8 LB: > { %s1905_s0 = sadd.s32 4294967295, %s1807_s20   ;;  %s1908_s6 = sadd.s32 1, %s1807_s20   ;;  %s1807_s20 = sphi %s1892_s20, %s2317_s20   ;;  %s1803_s19 = sphi %s1890_s19, %s2316_s19   ;;  %s1799_s18 = sphi %s1888_s18, %s2315_s18   ;;  %s1795_s17 = sphi %s1886_s17, %s2314_s17  }
   0x9   : > { %s33_s21 = ssub.s32 %s1807_s20, %s1908_s6  ;;  %s36_s22 = sadd.s32 1, %s1803_s19 }
   0xa   : > { %p34_p0 = scmp.eq.s32.totalorder %s33_s21, 0  ;;  %p43_p1 = scmp.ne.s32.totalorder %s1803_s19, %s1799_s18 }
   0xb   : > { %p44_p2 = scmp.eq.s32.totalorder %s1807_s20, 0  ;;  %p49_p3 = scmp.ne.s32.totalorder %s1799_s18, %s1795_s17 }
   0xc   : > { %s1918_s23 = scalar_select %p34_p0, %s1803_s19, %s36_s22  }
   0xd   : > { %p45_p4 = por %p44_p2, %p43_p1  ;;  %p50_p5 = scmp.eq.s32.totalorder %s1905_s0, 0 }
   0xe   : > { %p1172_p7 = scmp.ge.s32.totalorder %s1807_s20, 3 }
   0xf   : > { %p1921_p6 = por %p50_p5, %p49_p3 }
  0x10   : > { %281 = sbr.rel (%p1172_p7) target bundleno = 58 (0x3a), region = 40 }
  0x17   : > { %284 = sbr.rel (!%p45_p4) target bundleno = 58 (0x3a), region = 44  ;;  %s285_s25 = sand.u32 (%p45_p4), 1, %s1803_s19  }
  0x18   : > { %s1174_s26 = sshll.u32 (%p45_p4), %s1807_s20, 4  ;;  %s1173_s27 = sshll.u32 (%p45_p4), %s285_s25, 7 }
  0x19   : > { %s291_s28 = ssub.s32 (%p45_p4), 38, %s1174_s26  ;;  %s1931_s11 = scalar_lea.sflag (%p45_p4), [#allocation9], %s285_s25 }
  0x1a   : > { %p292_p8 = scmp.lt.s32.totalorder (%p45_p4), %s291_s28, 16  ;;  %s289_s12 = scalar_lea.vmem (%p45_p4), [#allocation8], %s1173_s27 }
  0x1e   : > { %s2319_s28 = smov (!%p292_p8, %s291_s28), 16 }
  0x1f   : > { %s1928_s29 = sshll.u32 %s2319_s28, 7 }
  0x20   : > { %s296_s30 = ssub.s32 2048, %s1928_s29 }
  0x21   : > { %297 = vsyncadd %s1931_s11, %s296_s30  ;;  %p1176_p9 = scmp.ne.s32.totalorder %s1928_s29, 0  ;;  %s1229_s13 = sshll.u32 %s1807_s20, 11 }
  0x22   : > { %s1939_s16 = scalar_lea.hbm %s2299_s1, %s1229_s13  ;;  %s302_s17 = sshll.u32 %s289_s12, 4  ;;  %s1941_s17 = int_to_ptr.vmem [resolvable:$true] %s302_s17 }
  0x23   : > { %s1685_s21 = scalar_lea.hbm %s1939_s16, %s1928_s29  ;;  %s1689_s26 = scalar_lea.hbm %s2299_s1, 4864 }
  0x24   : > { %p1686_p10 = scmp.ne.s32.totalorder %s1939_s16, %s1685_s21  ;;  %p1690_p13 = scmp.lt.u32.totalorder %s1939_s16, %s2299_s1 }
  0x25   : > { %p1691_p0 = scmp.lt.u32.totalorder %s1689_s26, %s1685_s21  ;;  %p1693_p2 = scmp.lt.u32.totalorder %s1685_s21, %s1939_s16 }
  0x26   : > { %p1687_p11 = pnand %p1686_p10, %p1176_p9 }
  0x27   : > { %p1692_p1 = por %p1691_p0, %p1690_p13 }
  0x28   : > { %p1688_p12 = pneg %p1687_p11 }
  0x29   : > { %p1694_p3 = por %p1693_p2, %p1692_p1 }
  0x2b   : > { %p1695_p4 = pnand %p1694_p3, %p1688_p12 }
  0x2d   : > { %1698 = shalt.err (!%p1695_p4)
}
  0x2e   : > { %s1699_s30 = scalar_lea.vmem %s1941_s17, %s1928_s29  ;;  %s1809_s12 = smov [#allocation8]  }
  0x2f   : > { %p1700_p5 = scmp.ne.s32.totalorder %s1941_s17, %s1699_s30  ;;  %s1703_s13 = sshll.u32 %s1809_s12, 4  ;;  %s1704_s13 = int_to_ptr.vmem [resolvable:$false] %s1703_s13 }
  0x30   : > { %s1705_s14 = scalar_lea.vmem %s1704_s13, 4096  ;;  %p1706_p10 = scmp.lt.s32.totalorder %s1941_s17, %s1704_s13 }
  0x31   : > { %p1701_p7 = pnand %p1700_p5, %p1176_p9  ;;  %p1707_p11 = scmp.lt.s32.totalorder %s1705_s14, %s1699_s30 }
  0x33   : > { %p1702_p8 = pneg %p1701_p7  ;;  %p1708_p13 = por %p1707_p11, %p1706_p10 }
  0x35   : > { %p1709_p0 = pnand %p1708_p13, %p1702_p8 }
  0x37   : > { %1712 = shalt.err (!%p1709_p0)
}
  0x38   : > { %s1810_s15 = smov 128   ;;  %s1811_s21 = smov 8  }
  0x39   : > { %308 = dma.hbm_to_vmem [thread:$0]  (%p1176_p9), %s1939_s16, %s1928_s29, %s1941_s17, %s1931_s11, %s1810_s15, %s1810_s15, %s1811_s21  }
  0x3a PF: > { %p1180_p12 = scmp.ge.s32.totalorder %s1807_s20, 1  ;;  %p316_p1 = scmp.lt.s32.totalorder %s1807_s20, 4 }
  0x3c   : > { %p317_p2 = pnand %p1180_p12, %p316_p1 }
  0x3d   : > { %s322_s22 = sand.u32 (!%p317_p2), 1, %s1799_s18  }
  0x3e   : > { %320 = sbr.rel (%p317_p2) target bundleno = 1764 (0x6e4), region = 52  ;;  %s1181_s25 = sshll.u32 (!%p317_p2), %s322_s22, 7 }
  0x3f   : > { %s323_s26 = scalar_lea.sflag (!%p317_p2), [#allocation9], %s322_s22  ;;  %s1971_s27 = scalar_lea.vmem (!%p317_p2), [#allocation8], %s1181_s25 }
  0x45   : > { %1782 = dma.done.wait (%p1921_p6), %s323_s26, 2048  }
  0x46   : > { %1784 = vsyncadd (%p1921_p6), %s323_s26, 4294965248  ;;  %p364_p9 = scmp.lt.s32.totalorder %s1905_s0, 2  ;;  %p1182_p3 = scmp.ne.s32.totalorder %s1905_s0, 0 }
  0x47   : > { %vm371_vm0 = vcmask (!%p1182_p3), 2048   ;;  %vm374_vm1 = vcmask (!%p1182_p3), 256000   ;;  %v1812_v1 = vmov (!%p1182_p3), -1e+30   ;;  %v1813_v2 = vmov (!%p1182_p3), 0.0  }
  0x48   : > { %s1979_s29 = scalar_select %p364_p9, %s1905_s0, 2 }
  0x49   : > { %370 = sbr.rel (%p1182_p3) target bundleno = 80 (0x50), region = 60  ;;  %372 = vst.msk [vmem:[#allocation2] sm:$0x7] (!%p1182_p3), %vm371_vm0, %v1812_v1  ;;  %373 = vst.msk [vmem:[#allocation3] sm:$0x7] (!%p1182_p3), %vm371_vm0, %v1813_v2 }
  0x4a   : > { %s366_s16 = scalar_lea.vmem %s2300_s2, %s1979_s29  ;;  %375 = vst.msk [vmem:[#allocation4] sm:$0x7] (!%p1182_p3), %vm374_vm1, %v1813_v2 }
  0x50 PF: > { %v394_v3 = vld [vmem:[%s2301_s3] sm:$0xff]  ;;  %v395_v4 = vld [vmem:[%s2301_s3 + $0x8] sm:$0xff]  ;;  %v396_v5 = vld [vmem:[%s2301_s3 + $0x10] sm:$0xff]  ;;  %v1814_v43 = vmov 0.0|0.0   ;;  %v562_v44 = vlaneseq  ;;  %s376_s12 = sld [smem:[#allocation6]]  ;;  %s1183_s13 = sshll.u32 %s1905_s0, 7 }
  0x51   : > { %v1438_v6 = vpack.c.bf16 %v395_v4, %v394_v3  ;;  %v397_v7 = vld [vmem:[%s2301_s3 + $0x18] sm:$0xff]  ;;  %v398_v9 = vld [vmem:[%s2301_s3 + $0x20] sm:$0xff]  ;;  %v399_v10 = vld [vmem:[%s2301_s3 + $0x28] sm:$0xff]  ;;  %1470 = vmatprep.subr.bf16.mxu1 %v1814_v43  ;;  %v2057_v47 = vstv %s1183_s13  ;;  %s1815_s15 = smov 96   ;;  %p1220_p6 = scmp.ne.s32.totalorder %s1905_s0, 2 }
  0x52   : > { %v1442_v8 = vpack.c.bf16 %v397_v7, %v396_v5  ;;  %v1446_v11 = vpack.c.bf16 %v399_v10, %v398_v9  ;;  %v378_v12 = vld [vmem:[%s1971_s27] sm:$0xff]  ;;  %v401_v14 = vld [vmem:[%s2301_s3 + $0x38] sm:$0xff]  ;;  %v402_v16 = vld [vmem:[%s2301_s3 + $0x40] sm:$0xff]  ;;  %v2053_v45 = vshrl.u32 %v562_v44, 7 }
  0x53   : > { %1439 = vmatprep.subr.bf16.mxu0 %v1438_v6  ;;  %v400_v13 = vld [vmem:[%s2301_s3 + $0x30] sm:$0xff]  ;;  %1333 = vmatprep.mubr.f32.mxu0 %v378_v12  ;;  %v403_v17 = vld [vmem:[%s2301_s3 + $0x48] sm:$0xff]  ;;  %v405_v20 = vld [vmem:[%s2301_s3 + $0x58] sm:$0xff] }
  0x54   : > { %1441 = vmatpush3.bf16.msra.mxu0 %v1438_v6  ;;  %v1450_v15 = vpack.c.bf16 %v401_v14, %v400_v13  ;;  %v1454_v18 = vpack.c.bf16 %v403_v17, %v402_v16  ;;  %v404_v19 = vld [vmem:[%s2301_s3 + $0x50] sm:$0xff]  ;;  %v406_v22 = vld [vmem:[%s2301_s3 + $0x60] sm:$0xff]  ;;  %v407_v23 = vld [vmem:[%s2301_s3 + $0x68] sm:$0xff]  ;;  %v564_v46 = vadd.s32 8, %v2053_v45  ;;  %v580_v48 = vadd.s32 %v2057_v47, %v2053_v45 }
  0x55   : > { %1443 = vmatprep.subr.bf16.mxu0 %v1442_v8  ;;  %v1458_v21 = vpack.c.bf16 %v405_v20, %v404_v19  ;;  %v1462_v24 = vpack.c.bf16 %v407_v23, %v406_v22  ;;  %v408_v25 = vld [vmem:[%s2301_s3 + $0x70] sm:$0xff]  ;;  %v409_v26 = vld [vmem:[%s2301_s3 + $0x78] sm:$0xff]  ;;  %v381_v30 = vld [vmem:[%s1971_s27 + $0x18] sm:$0xff]  ;;  %v565_v50 = vadd.s32 16, %v2053_v45  ;;  %v566_v51 = vadd.s32 24, %v2053_v45 }
  0x56   : > { %v1466_v27 = vpack.c.bf16 %v409_v26, %v408_v25  ;;  %v379_v28 = vld [vmem:[%s1971_s27 + $0x8] sm:$0xff]  ;;  %v380_v29 = vld [vmem:[%s1971_s27 + $0x10] sm:$0xff]  ;;  %v382_v31 = vld [vmem:[%s1971_s27 + $0x20] sm:$0xff]  ;;  %v581_v49 = vadd.s32 %v2057_v47, %v564_v46  ;;  %v2064_v52 = vstv %s376_s12  ;;  %v567_v54 = vadd.s32 32, %v2053_v45 }
  0x57   : > { %v383_v32 = vld [vmem:[%s1971_s27 + $0x28] sm:$0xff]  ;;  %v384_v33 = vld [vmem:[%s1971_s27 + $0x30] sm:$0xff]  ;;  %v385_v34 = vld [vmem:[%s1971_s27 + $0x38] sm:$0xff]  ;;  %v568_v55 = vadd.s32 40, %v2053_v45  ;;  %vm597_vm2 = vcmp.lt.s32.totalorder %v580_v48, %v2064_v52  ;;  %v582_v57 = vadd.s32 %v2057_v47, %v565_v50  ;;  %v583_v58 = vadd.s32 %v2057_v47, %v566_v51 }
  0x58   : > { %1445 = vmatpush3.bf16.msra.mxu0 %v1442_v8  ;;  %v386_v35 = vld [vmem:[%s1971_s27 + $0x40] sm:$0xff]  ;;  %v387_v36 = vld [vmem:[%s1971_s27 + $0x48] sm:$0xff]  ;;  %v388_v37 = vld [vmem:[%s1971_s27 + $0x50] sm:$0xff]  ;;  %vm598_vm3 = vcmp.lt.s32.totalorder %v581_v49, %v2064_v52  ;;  %v584_v62 = vadd.s32 %v2057_v47, %v567_v54  ;;  %v569_v0 = vadd.s32 48, %v2053_v45  ;;  %v570_v1 = vadd.s32 56, %v2053_v45 }
  0x59   : > { %1447 = vmatprep.subr.bf16.mxu0 %v1446_v11  ;;  %v389_v38 = vld [vmem:[%s1971_s27 + $0x58] sm:$0xff]  ;;  %v390_v39 = vld [vmem:[%s1971_s27 + $0x60] sm:$0xff]  ;;  %v391_v40 = vld [vmem:[%s1971_s27 + $0x68] sm:$0xff]  ;;  %v585_v63 = vadd.s32 %v2057_v47, %v568_v55  ;;  %vm599_vm5 = vcmp.lt.s32.totalorder %v582_v57, %v2064_v52  ;;  %vm600_vm6 = vcmp.lt.s32.totalorder %v583_v58, %v2064_v52  ;;  %v572_v12 = vadd.s32 72, %v2053_v45 }
  0x5a   : > { %v392_v41 = vld [vmem:[%s1971_s27 + $0x70] sm:$0xff]  ;;  %v393_v42 = vld [vmem:[%s1971_s27 + $0x78] sm:$0xff]  ;;  %vm1504_vm4 = vmpackc.low %vm598_vm3, %vm597_vm2  ;;  %vm601_vm7 = vcmp.lt.s32.totalorder %v584_v62, %v2064_v52  ;;  %v586_v7 = vadd.s32 %v2057_v47, %v569_v0  ;;  %v587_v8 = vadd.s32 %v2057_v47, %v570_v1  ;;  %v573_v16 = vadd.s32 80, %v2053_v45 }
  0x5b   : > { %v2069_v53 = vld [vmem:[%s2302_s4] ss:$0 sm:$0xff]  ;;  %vm1508_vm8 = vmpackc.low %vm600_vm6, %vm599_vm5  ;;  %vm602_vm9 = vcmp.lt.s32.totalorder %v585_v63, %v2064_v52  ;;  %v574_v17 = vadd.s32 88, %v2053_v45  ;;  %v577_v48 = vadd.s32 112, %v2053_v45  ;;  %v578_v49 = vadd.s32 120, %v2053_v45 }
  0x5c   : > { %1449 = vmatpush3.bf16.msra.mxu0 %v1446_v11  ;;  %v571_v11 = vadd.s32 64, %v2053_v45  ;;  %vm1512_vm10 = vmpackc.low %vm602_vm9, %vm601_vm7  ;;  %vm603_vm11 = vcmp.lt.s32.totalorder %v586_v7, %v2064_v52  ;;  %vm604_vm12 = vcmp.lt.s32.totalorder %v587_v8, %v2064_v52 }
  0x5d   : > { %1451 = vmatprep.subr.bf16.mxu0 %v1450_v15  ;;  %vm1516_vm13 = vmpackc.low %vm604_vm12, %vm603_vm11  ;;  %vm736_vm11 = vcmask 31744  }
  0x5e   : > { %v588_v20 = vadd.s32 %v2057_v47, %v571_v11  ;;  %vm2166_vm12 = vmpackc.low %vm736_vm11, %vm736_vm11 }
  0x60   : > { %1453 = vmatpush3.bf16.msra.mxu0 %v1450_v15  ;;  %vm605_vm14 = vcmp.lt.s32.totalorder %v588_v20, %v2064_v52 }
  0x61   : > { %1455 = vmatprep.subr.bf16.mxu0 %v1454_v18 }
  0x64   : > { %1457 = vmatpush3.bf16.msra.mxu0 %v1454_v18 }
  0x65   : > { %1459 = vmatprep.subr.bf16.mxu0 %v1458_v21 }
  0x68   : > { %1461 = vmatpush3.bf16.msra.mxu0 %v1458_v21  ;;  %v589_v21 = vadd.s32 %v2057_v47, %v572_v12 }
  0x69   : > { %1463 = vmatprep.subr.bf16.mxu0 %v1462_v24 }
  0x6a   : > { %vm606_vm15 = vcmp.lt.s32.totalorder %v589_v21, %v2064_v52  ;;  %v1817_v21 = vmov 0.0  }
  0x6b   : > { %vm1520_vm2 = vmpackc.low %vm606_vm15, %vm605_vm14 }
  0x6c   : > { %1465 = vmatpush3.bf16.msra.mxu0 %v1462_v24 }
  0x6d   : > { %1467 = vmatprep.subr.bf16.mxu0 %v1466_v27 }
  0x70   : > { %1469 = vmatpush3.bf16.msra.mxu0 %v1466_v27  ;;  %v590_v27 = vadd.s32 %v2057_v47, %v573_v16 }
  0x71   : > { %1502 = vmatprep.subr.bf16.mxu0 %v1814_v43 }
  0x72   : > { %vm607_vm0 = vcmp.lt.s32.totalorder %v590_v27, %v2064_v52 }
  0x73   : > { %1334 = vmatmul.mubr.f32.vlgmr.msra.gmra.mrb[0].mxu0 %v379_v28  ;;  %v591_v28 = vadd.s32 %v2057_v47, %v574_v17 }
  0x74   : > { %1336 = vmatprep.mubr.f32.mxu0 %v380_v29 }
  0x75   : > { %vm608_vm1 = vcmp.lt.s32.totalorder %v591_v28, %v2064_v52 }
  0x76   : > { %vm1524_vm3 = vmpackc.low %vm608_vm1, %vm607_vm0  ;;  %vm861_vm0 = vcmask 1042432   ;;  %vm884_vm1 = vcmask 2048  }
  0x77   : > { %1337 = vmatmul.mubr.f32.gmra.mrb[2].mxu0 %v381_v30  ;;  %v575_v30 = vadd.s32 96, %v2053_v45 }
  0x78   : > { %1339 = vmatprep.mubr.f32.mxu0 %v382_v31  ;;  %v576_v31 = vadd.s32 104, %v2053_v45 }
  0x7b   : > { %1340 = vmatmul.mubr.f32.gmra.mrb[4].mxu0 %v383_v32 }
  0x7c   : > { %1342 = vmatprep.mubr.f32.mxu0 %v384_v33 }
  0x7f   : > { %1343 = vmatmul.mubr.f32.gmra.mrb[6].mxu0 %v385_v34 }
  0x80   : > { %1345 = vmatprep.mubr.f32.mxu0 %v386_v35 }
  0x83   : > { %1346 = vmatmul.mubr.f32.gmra.mrb[8].mxu0 %v387_v36 }
  0x84   : > { %1348 = vmatprep.mubr.f32.mxu0 %v388_v37 }
  0x87   : > { %1349 = vmatmul.mubr.f32.gmra.mrb[10].mxu0 %v389_v38 }
  0x88   : > { %1351 = vmatprep.mubr.f32.mxu0 %v390_v39 }
  0x8b   : > { %1352 = vmatmul.mubr.f32.gmra.mrb[12].mxu0 %v391_v40  ;;  %v592_v40 = vadd.s32 %v2057_v47, %v575_v30 }
  0x8c   : > { %1354 = vmatprep.mubr.f32.mxu0 %v392_v41  ;;  %v593_v41 = vadd.s32 %v2057_v47, %v576_v31 }
  0x8e   : > { %vm610_vm5 = vcmp.lt.s32.totalorder %v593_v41, %v2064_v52 }
  0x8f   : > { %1355 = vmatmul.mubr.f32.gmra.mrb[14].mxu0 %v393_v42 }
 0x146   : > { %v1335_v56 = vpop.f32.mrb[0].mxu0 }
 0x147   : > { %v489_v59 = vadd.f32 %v1335_v56, %v2069_v53  ;;  %v483_v60 = vpop.f32.mrb[1].mxu0 }
 0x148   : > { %v484_v61 = vadd.f32 %v2069_v53, %v483_v60  ;;  %v594_v60 = vadd.s32 %v2057_v47, %v577_v48 }
 0x149   : > { %1642 = vtanh.f32 %v489_v59 }
 0x14a   : > { %1644 = vtanh.f32 %v484_v61  ;;  %v1503_v2 = vpack.c.bf16 %v489_v59, %v484_v61  ;;  %v1338_v3 = vpop.f32.mrb[2].mxu0  ;;  %v595_v61 = vadd.s32 %v2057_v47, %v578_v49  ;;  %vm611_vm7 = vcmp.lt.s32.totalorder %v594_v60, %v2064_v52 }
 0x14b   : > { %v499_v4 = vadd.f32 %v1338_v3, %v2069_v53  ;;  %v493_v5 = vpop.f32.mrb[3].mxu0 }
 0x14c   : > { %1505 = vmatpush3.bf16.msk.msra.mxu0 %vm1504_vm4, %v1503_v2  ;;  %v494_v6 = vadd.f32 %v2069_v53, %v493_v5  ;;  %vm609_vm4 = vcmp.lt.s32.totalorder %v592_v40, %v2064_v52 }
 0x14d   : > { %1646 = vtanh.f32 %v499_v4  ;;  %1506 = vmatprep.subr.bf16.mxu0 %v1814_v43  ;;  %vm1528_vm6 = vmpackc.low %vm610_vm5, %vm609_vm4  ;;  %vm992_vm4 = vcmask (!%p1220_p6), 261120   ;;  %vm1067_vm5 = vcmask (!%p1220_p6), 26624  }
 0x14e   : > { %1648 = vtanh.f32 %v494_v6  ;;  %v1507_v9 = vpack.c.bf16 %v499_v4, %v494_v6  ;;  %v1341_v10 = vpop.f32.mrb[4].mxu0 }
 0x14f   : > { %v509_v13 = vadd.f32 %v1341_v10, %v2069_v53  ;;  %v503_v14 = vpop.f32.mrb[5].mxu0 }
 0x150   : > { %1509 = vmatpush3.bf16.msk.msra.mxu0 %vm1508_vm8, %v1507_v9  ;;  %v504_v15 = vadd.f32 %v2069_v53, %v503_v14  ;;  %vm612_vm8 = vcmp.lt.s32.totalorder %v595_v61, %v2064_v52 }
 0x151   : > { %1650 = vtanh.f32 %v509_v13  ;;  %1510 = vmatprep.subr.bf16.mxu0 %v1814_v43  ;;  %vm1532_vm9 = vmpackc.low %vm612_vm8, %vm611_vm7 }
 0x152   : > { %1652 = vtanh.f32 %v504_v15  ;;  %v1511_v18 = vpack.c.bf16 %v509_v13, %v504_v15  ;;  %v1344_v19 = vpop.f32.mrb[6].mxu0 }
 0x153   : > { %v1643_v22 = vpop.eup %1642  ;;  %v519_v23 = vadd.f32 %v1344_v19, %v2069_v53  ;;  %v513_v24 = vpop.f32.mrb[7].mxu0 }
 0x154   : > { %v1645_v25 = vpop.eup %1644  ;;  %1513 = vmatpush3.bf16.msk.msra.mxu0 %vm1512_vm10, %v1511_v18  ;;  %v514_v26 = vadd.f32 %v2069_v53, %v513_v24  ;;  %vm1816_vm10 = vmmov 0  }
 0x155   : > { %v1600_v29 = vpack.i.bf16 %v1643_v22, %v1645_v25  ;;  %1654 = vtanh.f32 %v519_v23  ;;  %1514 = vmatprep.subr.bf16.mxu0 %v1814_v43  ;;  %1389 = vmatprep.mubr.msk.f32.mxu1 %vm1816_vm10, %v1817_v21  ;;  %v678_v22 = vld [vmem:[#allocation7] sm:$0x1] }
 0x156   : > { %1656 = vtanh.f32 %v514_v26  ;;  %v1515_v32 = vpack.c.bf16 %v519_v23, %v514_v26  ;;  %v1347_v33 = vpop.f32.mrb[8].mxu0  ;;  %1424 = vmatprep.mubr.msk.f32.mxu0 %vm1816_vm10, %v1817_v21  ;;  %v1818_v23 = vmov 0  }
 0x157   : > { %v1647_v34 = vpop.eup %1646  ;;  %1601 = vrot.lane.b32.xlu0 %v1600_v29, %s1815_s15  ;;  %v529_v35 = vadd.f32 %v1347_v33, %v2069_v53  ;;  %v523_v36 = vpop.f32.mrb[9].mxu0  ;;  %1641 = vset.pattern.permute.xlu1 %v1818_v23 }
 0x158   : > { %v1649_v37 = vpop.eup %1648  ;;  %1517 = vmatpush3.bf16.msk.msra.mxu0 %vm1516_vm13, %v1515_v32  ;;  %v524_v38 = vadd.f32 %v2069_v53, %v523_v36  ;;  %1640 = vset.pattern.permute.xlu0 %v1818_v23 }
 0x159   : > { %v1605_v39 = vpack.i.bf16 %v1647_v34, %v1649_v37  ;;  %1658 = vtanh.f32 %v529_v35  ;;  %1518 = vmatprep.subr.bf16.mxu0 %v1814_v43 }
 0x15a   : > { %1660 = vtanh.f32 %v524_v38  ;;  %v1519_v42 = vpack.c.bf16 %v529_v35, %v524_v38  ;;  %v1350_v46 = vpop.f32.mrb[10].mxu0 }
 0x15b   : > { %v1651_v50 = vpop.eup %1650  ;;  %1606 = vrot.lane.b32.xlu0 %v1605_v39, %s1815_s15  ;;  %v539_v51 = vadd.f32 %v1350_v46, %v2069_v53  ;;  %v533_v54 = vpop.f32.mrb[11].mxu0 }
 0x15c   : > { %v1653_v55 = vpop.eup %1652  ;;  %1521 = vmatpush3.bf16.msk.msra.mxu0 %vm1520_vm2, %v1519_v42  ;;  %v534_v56 = vadd.f32 %v2069_v53, %v533_v54  ;;  %vm964_vm2 = vcmask 256000  }
 0x15d   : > { %v1610_v57 = vpack.i.bf16 %v1651_v50, %v1653_v55  ;;  %1662 = vtanh.f32 %v539_v51  ;;  %1522 = vmatprep.subr.bf16.mxu0 %v1814_v43 }
 0x15e   : > { %1664 = vtanh.f32 %v534_v56  ;;  %v1523_v58 = vpack.c.bf16 %v539_v51, %v534_v56  ;;  %v1353_v59 = vpop.f32.mrb[12].mxu0 }
 0x15f   : > { %v1655_v62 = vpop.eup %1654  ;;  %1611 = vrot.lane.b32.xlu1 %v1610_v57, %s1815_s15  ;;  %v549_v63 = vadd.f32 %v1353_v59, %v2069_v53  ;;  %v543_v0 = vpop.f32.mrb[13].mxu0 }
 0x160   : > { %v1657_v1 = vpop.eup %1656  ;;  %1525 = vmatpush3.bf16.msk.msra.mxu0 %vm1524_vm3, %v1523_v58  ;;  %v544_v2 = vadd.f32 %v2069_v53, %v543_v0  ;;  %v844_v0 = vand.u32 127, %v562_v44  ;;  %vm1821_vm3 = vmmov (!%p1220_p6), 0  }
 0x161   : > { %v1615_v3 = vpack.i.bf16 %v1655_v62, %v1657_v1  ;;  %1666 = vtanh.f32 %v549_v63  ;;  %1526 = vmatprep.subr.bf16.mxu0 %v1814_v43  ;;  %v686_v1 = vsub.s32 0, %v2053_v45 }
 0x162   : > { %1668 = vtanh.f32 %v544_v2  ;;  %v1527_v4 = vpack.c.bf16 %v549_v63, %v544_v2  ;;  %v1356_v5 = vpop.f32.mrb[14].mxu0  ;;  %v677_v63 = vld [vmem:[%s2303_s5] sm:$0x1] }
 0x163   : > { %v1659_v6 = vpop.eup %1658  ;;  %1616 = vrot.lane.b32.xlu1 %v1615_v3, %s1815_s15  ;;  %v559_v7 = vadd.f32 %v1356_v5, %v2069_v53  ;;  %v553_v8 = vpop.f32.mrb[15].mxu0  ;;  %v845_v3 = vadd.s32 %v844_v0, %v2057_v47 }
 0x164   : > { %v1661_v9 = vpop.eup %1660  ;;  %1529 = vmatpush3.bf16.msk.msra.mxu0 %vm1528_vm6, %v1527_v4  ;;  %v554_v10 = vadd.f32 %v2069_v53, %v553_v8 }
 0x165   : > { %v1620_v11 = vpack.i.bf16 %v1659_v6, %v1661_v9  ;;  %1670 = vtanh.f32 %v559_v7  ;;  %1530 = vmatprep.subr.bf16.mxu0 %v1814_v43  ;;  %vm846_vm13 = vcmp.lt.s32.totalorder %v845_v3, %v2064_v52 }
 0x166   : > { %1672 = vtanh.f32 %v554_v10  ;;  %v1531_v12 = vpack.c.bf16 %v559_v7, %v554_v10  ;;  %v860_v10 = vld [vmem:[#allocation2] sm:$0x7] }
 0x167   : > { %v1663_v13 = vpop.eup %1662  ;;  %1621 = vrot.lane.b32.xlu0 %v1620_v11, %s1815_s15 }
 0x168   : > { %v1665_v14 = vpop.eup %1664  ;;  %1533 = vmatpush3.bf16.msk.msra.mxu0 %vm1532_vm9, %v1531_v12 }
 0x169   : > { %v1625_v15 = vpack.i.bf16 %v1663_v13, %v1665_v14 }
 0x16b   : > { %v1667_v16 = vpop.eup %1666  ;;  %1626 = vrot.lane.b32.xlu1 %v1625_v15, %s1815_s15 }
 0x16c   : > { %v1669_v17 = vpop.eup %1668 }
 0x16d   : > { %v1630_v18 = vpack.i.bf16 %v1667_v16, %v1669_v17 }
 0x16f   : > { %v1671_v19 = vpop.eup %1670  ;;  %1631 = vrot.lane.b32.xlu0 %v1630_v18, %s1815_s15 }
 0x170   : > { %v1673_v53 = vpop.eup %1672 }
 0x171   : > { %v1635_v20 = vpack.i.bf16 %v1671_v19, %v1673_v53 }
 0x173   : > { %1636 = vrot.lane.b32.xlu1 %v1635_v20, %s1815_s15  ;;  %681 = vperm.xlu0 %1640, %v678_v22   ;;  %v878_v20 = vld [vmem:[#allocation3] sm:$0x7] }
 0x1c9   : > { %v1602_v24 = vpop.permute.xlu0 %1601 }
 0x1ca   : > { %v1604_v25 = vunpack.i.h.bf16 %v1602_v24  ;;  %v1603_v26 = vunpack.i.l.bf16 %v1602_v24 }
 0x1cc   : > { %v1471_v28 = vpack.c.bf16 %v1604_v25, %v1603_v26  ;;  %v886_v25 = vld [vmem:[#allocation4] sm:$0x7] }
 0x1cd   : > { %v1607_v29 = vpop.permute.xlu0 %1606 }
 0x1ce   : > { %1473 = vmatpush3.bf16.xpose.msk.msra.mxu1 %vm2166_vm12, %v1471_v28  ;;  %v1609_v30 = vunpack.i.h.bf16 %v1607_v29  ;;  %v1608_v31 = vunpack.i.l.bf16 %v1607_v29 }
 0x1cf   : > { %1474 = vmatprep.subr.bf16.mxu1 %v1814_v43 }
 0x1d0   : > { %v1475_v32 = vpack.c.bf16 %v1609_v30, %v1608_v31  ;;  %v1819_v31 = vmov (!%p1220_p6), 0  }
 0x1d1   : > { %v1612_v33 = vpop.permute.xlu1 %1611 }
 0x1d2   : > { %v1614_v34 = vunpack.i.h.bf16 %v1612_v33  ;;  %v1613_v35 = vunpack.i.l.bf16 %v1612_v33  ;;  %v982_v33 = vld [vmem:[%s2305_s7 + $0x8] sm:$0xff] (!%p1220_p6) }
 0x1d4   : > { %v1479_v36 = vpack.c.bf16 %v1614_v34, %v1613_v35  ;;  %v983_v34 = vld [vmem:[%s2305_s7 + $0x10] sm:$0xff] (!%p1220_p6)  ;;  %v1820_v35 = vmov (!%p1220_p6), 0.0|0.0  }
 0x1d5   : > { %v1617_v37 = vpop.permute.xlu1 %1616  ;;  %1534 = vmatprep.subr.bf16.mxu0 (!%p1220_p6), %v1820_v35 }
 0x1d6   : > { %1477 = vmatpush3.bf16.xpose.msk.msra.mxu1 %vm2166_vm12, %v1475_v32  ;;  %v1619_v38 = vunpack.i.h.bf16 %v1617_v37  ;;  %v1618_v39 = vunpack.i.l.bf16 %v1617_v37  ;;  %v981_v32 = vld [vmem:[%s2305_s7] sm:$0xff] (!%p1220_p6)  ;;  %v984_v37 = vld [vmem:[%s2305_s7 + $0x18] sm:$0xff] (!%p1220_p6) }
 0x1d7   : > { %1478 = vmatprep.subr.bf16.mxu1 %v1814_v43 }
 0x1d8   : > { %v1483_v40 = vpack.c.bf16 %v1619_v38, %v1618_v39  ;;  %v1822_v38 = vmov (!%p1220_p6), 0.0   ;;  %v1538_v39 = vpack.c.bf16 (!%p1220_p6), %v984_v37, %v983_v34 }
 0x1d9   : > { %v1622_v41 = vpop.permute.xlu0 %1621 }
 0x1da   : > { %v1624_v42 = vunpack.i.h.bf16 %v1622_v41  ;;  %v1623_v46 = vunpack.i.l.bf16 %v1622_v41 }
 0x1dc   : > { %v1487_v48 = vpack.c.bf16 %v1624_v42, %v1623_v46 }
 0x1dd   : > { %v1627_v49 = vpop.permute.xlu1 %1626 }
 0x1de   : > { %1481 = vmatpush3.bf16.xpose.msk.msra.mxu1 %vm2166_vm12, %v1479_v36  ;;  %v1629_v50 = vunpack.i.h.bf16 %v1627_v49  ;;  %v1628_v51 = vunpack.i.l.bf16 %v1627_v49  ;;  %v1535_v36 = vpack.c.bf16 (!%p1220_p6), %v982_v33, %v981_v32 }
 0x1df   : > { %1482 = vmatprep.subr.bf16.mxu1 %v1814_v43 }
 0x1e0   : > { %v1491_v54 = vpack.c.bf16 %v1629_v50, %v1628_v51 }
 0x1e1   : > { %v1632_v55 = vpop.permute.xlu0 %1631 }
 0x1e2   : > { %v1634_v56 = vunpack.i.h.bf16 %v1632_v55  ;;  %v1633_v57 = vunpack.i.l.bf16 %v1632_v55 }
 0x1e4   : > { %v1495_v58 = vpack.c.bf16 %v1634_v56, %v1633_v57 }
 0x1e5   : > { %v1637_v59 = vpop.permute.xlu1 %1636 }
 0x1e6   : > { %1485 = vmatpush3.bf16.xpose.msk.msra.mxu1 %vm2166_vm12, %v1483_v40  ;;  %v1639_v60 = vunpack.i.h.bf16 %v1637_v59  ;;  %v1638_v61 = vunpack.i.l.bf16 %v1637_v59 }
 0x1e7   : > { %1486 = vmatprep.subr.bf16.mxu1 %v1814_v43 }
 0x1e8   : > { %v1499_v62 = vpack.c.bf16 %v1639_v60, %v1638_v61 }
 0x1ee   : > { %1489 = vmatpush3.bf16.xpose.msk.msra.mxu1 %vm2166_vm12, %v1487_v48  ;;  %v1221_v48 = vld [vmem:[%s2306_s8] ss:$0 sm:$0xff] (!%p1220_p6) }
 0x1ef   : > { %1490 = vmatprep.subr.bf16.mxu1 %v1814_v43 }
 0x1f2   : > { %v682_v2 = vpop.permute.xlu0 %681 }
 0x1f3   : > { %v687_v4 = vrot.slane %v682_v2, %v686_v1 }
 0x1f6   : > { %1493 = vmatpush3.bf16.xpose.msk.msra.mxu1 %vm2166_vm12, %v1491_v54 }
 0x1f7   : > { %1494 = vmatprep.subr.bf16.mxu1 %v1814_v43 }
 0x1fe   : > { %1497 = vmatpush3.bf16.xpose.msk.msra.mxu1 %vm2166_vm12, %v1495_v58 }
 0x1ff   : > { %1498 = vmatprep.subr.bf16.mxu1 %v1814_v43  ;;  %v1202_v43 = vld [vmem:[%s366_s16] ss:$0 sm:$0xff] }
 0x200   : > { %vm851_vm14 = vcmp.eq.s32.totalorder %v2053_v45, %v1202_v43 }
 0x201   : > { %vm2207_vm15 = vmand %vm851_vm14, %vm846_vm13 }
 0x202   : > { %v1203_v17 = vsel %vm2207_vm15, 1.0, %v1817_v21 }
 0x206   : > { %1501 = vmatpush3.bf16.xpose.msk.msra.mxu1 %vm2166_vm12, %v1499_v62 }
 0x20d   : > { %1390 = vmatmul.mubr.msk.f32.vlgmr.msra.gmra.mrb[0].mxu1 %vm736_vm11, %v677_v63 }
 0x2e0   : > { %v838_v5 = vpop.f32.mrb[0].mxu1 }
 0x2e1   : > { %v839_v6 = vadd.f32 %v838_v5, %v687_v4  ;;  %v1391_v7 = vpop.f32.mrb[1].mxu1 }
 0x2e3   : > { %v858_v8 = vrot.slane %v839_v6, %v686_v1 }
 0x2e5   : > { %v859_v47 = vsel %vm2207_vm15, %v858_v8, -1e+30 }
 0x2e6   : > { %v862_v9 = vsel %vm861_vm0, %v859_v47, -inf }
 0x2e7   : > { %863 = vmax.xlane.f32.xlu1 %v862_v9 }
 0x374   : > { %v864_v52 = vpop.xlane.xlu1 %863 }
 0x375   : > { %v865_v11 = vmax.f32 %v860_v10, %v864_v52 }
 0x377   : > { %v866_v45 = vsub.f32 %v860_v10, %v865_v11  ;;  %966 = vst.msk [vmem:[#allocation2] sm:$0x7] %vm884_vm1, %v865_v11  ;;  %871 = vperm.xlu0 %1640, %v865_v11  }
 0x379   : > { %v867_v12 = vmul.f32 1.442695, %v866_v45 }
 0x37b   : > { %1674 = vpow2.f32 %v867_v12  ;;  %1678 = vset.pattern.permute.xlu0 (!%p1220_p6), %v1819_v31 }
 0x385   : > { %v1675_v13 = vpop.eup %1674 }
 0x386   : > { %889 = vperm.xlu1 %1641, %v1675_v13   ;;  %v879_v22 = vmul.f32 %v1675_v13, %v878_v20 }
 0x3f6   : > { %v872_v14 = vpop.permute.xlu0 %871 }
 0x3f7   : > { %v874_v15 = vsub.f32 %v859_v47, %v872_v14 }
 0x3f9   : > { %v875_v16 = vmul.f32 1.442695, %v874_v15 }
 0x3fb   : > { %1676 = vpow2.f32 %v875_v16 }
 0x405   : > { %v1677_v18 = vpop.eup %1676  ;;  %v890_v26 = vpop.permute.xlu1 %889 }
 0x406   : > { %v877_v19 = vmul.f32 %v1677_v18, %v1203_v17  ;;  %v892_v27 = vmul.f32 %v890_v26, %v886_v25 }
 0x408   : > { %1425 = vmatmul.mubr.f32.vlgmr.msra.gmra.mrb[16].mxu0 %v877_v19  ;;  %v880_v53 = vsel %vm861_vm0, %v877_v19, 0.0 }
 0x409   : > { %881 = vadd.xlane.f32.xlu0 %v880_v53  ;;  %1435 = vmatprep.mubr.msk.f32.mxu0 (!%p1220_p6), %vm1821_vm3, %v1822_v38 }
 0x40a   : > { %1536 = vmatpush3.bf16.msra.mxu0 (!%p1220_p6), %v1535_v36 }
 0x40b   : > { %1537 = vmatprep.subr.bf16.mxu0 (!%p1220_p6), %v1820_v35 }
 0x40e   : > { %1539 = vmatpush3.bf16.msra.mxu0 (!%p1220_p6), %v1538_v39 }
 0x496   : > { %v882_v23 = vpop.xlane.xlu0 %881 }
 0x497   : > { %v883_v24 = vadd.f32 %v882_v23, %v879_v22 }
 0x499   : > { %885 = vst.msk [vmem:[#allocation3] sm:$0x7] %vm884_vm1, %v883_v24 }
 0x4a0   : > { %v972_v21 = vld [vmem:[#allocation3] sm:$0x7] (!%p1220_p6) }
 0x4a1   : > { %975 = vperm.xlu0 (!%p1220_p6), %1678, %v972_v21  }
 0x4d8   : > { %970 = sbr.rel (%p1220_p6) target bundleno = 1716 (0x6b4), region = 64 }
 0x4db   : > { %v959_v28 = vpop.f32.mrb[16].mxu0 }
 0x4dc   : > { %v963_v29 = vadd.f32 %v959_v28, %v892_v27  ;;  %v1426_v30 = vpop.f32.mrb[17].mxu0 }
 0x4de   : > { %965 = vst.msk [vmem:[#allocation4] sm:$0x7] %vm964_vm2, %v963_v29 }
 0x4e5   : > { %v971_v41 = vld [vmem:[#allocation4] sm:$0x7] }
 0x520   : > { %v976_v40 = vpop.permute.xlu0 %975 }
 0x521   : > { %1679 = vrcp.f32 %v976_v40 }
 0x52b   : > { %v1680_v42 = vpop.eup %1679 }
 0x52c   : > { %v979_v46 = vmul.f32 %v1680_v42, %v971_v41 }
 0x52e   : > { %980 = vst.msk [vmem:[#allocation11] sm:$0x7] %vm964_vm2, %v979_v46  ;;  %1436 = vmatmul.mubr.msk.f32.vlgmr.msra.gmra.mrb[0].mxu0 %vm992_vm4, %v979_v46 }
 0x601   : > { %v1062_v49 = vpop.f32.mrb[0].mxu0 }
 0x602   : > { %v1063_v50 = vadd.f32 %v1221_v48, %v1062_v49  ;;  %v1437_v51 = vpop.f32.mrb[1].mxu0 }
 0x604   : > { %v1066_v54 = vmul.f32 %v1063_v50, %v1063_v50 }
 0x606   : > { %v1068_v55 = vsel %vm1067_vm5, %v1066_v54, 0.0 }
 0x607   : > { %1069 = vadd.xlane.f32.xlu0 %v1068_v55 }
 0x694   : > { %v1070_v56 = vpop.xlane.xlu0 %1069 }
 0x695   : > { %1681 = vrsqrt.f32 %v1070_v56  ;;  %vm1073_vm6 = vcmp.eq.f32.partialorder %v1070_v56, inf  ;;  %v1076_v59 = vand.u32 2147483648, %v1070_v56  ;;  %vm1075_vm7 = vcmp.eq.f32.partialorder %v1070_v56, 0.0 }
 0x69f   : > { %v1682_v57 = vpop.eup %1681 }
 0x6a0   : > { %v1072_v58 = vmul.f32 %v1682_v57, %v1070_v56 }
 0x6a2   : > { %v1074_v60 = vsel %vm1073_vm6, %v1070_v56, %v1072_v58 }
 0x6a3   : > { %v1077_v61 = vsel %vm1075_vm7, %v1076_v59, %v1074_v60 }
 0x6a4   : > { %v1078_v62 = vmax.f32 %v1077_v61, 1e-12 }
 0x6a6   : > { %1683 = vrcp.f32 %v1078_v62 }
 0x6b0   : > { %v1684_v63 = vpop.eup %1683 }
 0x6b1   : > { %v1080_v0 = vmul.f32 %v1684_v63, %v1063_v50 }
 0x6b3   : > { %1081 = vst.msk [vmem:[#allocation12] sm:$0x7] %vm1067_vm5, %v1080_v0 }
 0x6b4 PF: > { %p1549_p4 = scmp.eq.s32.totalorder %s1905_s0, 2  ;;  %s1823_s27 = smov [#allocation11]  }
 0x6b5   : > { %s1089_s14 = sshll.u32 %s1823_s27, 4  ;;  %s1824_s15 = smov [#allocation12]   ;;  %s1090_s14 = int_to_ptr.vmem [resolvable:$true] %s1089_s14 }
 0x6b6   : > { %s1100_s21 = sshll.u32 %s1824_s15, 4  ;;  %s1713_s22 = scalar_lea.vmem %s1090_s14, 64  ;;  %s1101_s21 = int_to_ptr.vmem [resolvable:$true] %s1100_s21 }
 0x6b7   : > { %p1714_p5 = scmp.ne.s32.totalorder %s1090_s14, %s1713_s22  ;;  %p1720_p10 = scmp.lt.s32.totalorder %s1090_s14, %s1090_s14 }
 0x6b8   : > { %p1721_p11 = scmp.lt.s32.totalorder %s1713_s22, %s1713_s22 }
 0x6b9   : > { %p1715_p7 = pnand %p1714_p5, %p1549_p4 }
 0x6ba   : > { %p1722_p13 = por %p1721_p11, %p1720_p10 }
 0x6bb   : > { %p1716_p8 = pneg %p1715_p7 }
 0x6bd   : > { %p1723_p0 = pnand %p1722_p13, %p1716_p8 }
 0x6bf   : > { %1726 = shalt.err (!%p1723_p0)
}
 0x6c0   : > { %s1727_s29 = scalar_lea.hbm %s2307_s9, 64 }
 0x6c1   : > { %p1728_p12 = scmp.ne.s32.totalorder %s2307_s9, %s1727_s29  ;;  %p1733_p9 = scmp.lt.u32.totalorder %s1727_s29, %s2307_s9 }
 0x6c3   : > { %p1729_p1 = pnand %p1728_p12, %p1549_p4 }
 0x6c5   : > { %p1730_p2 = pneg %p1729_p1 }
 0x6c7   : > { %p1735_p3 = pnand %p1733_p9, %p1730_p2 }
 0x6c9   : > { %1738 = shalt.err (!%p1735_p3)
}
 0x6ca   : > { %1542 = dma.vmem_to_hbm [thread:$0]  (%p1549_p4), %s1090_s14, 64, %s2307_s9, [#allocation10]  }
 0x6cb   : > { %s1739_s30 = scalar_lea.vmem %s1101_s21, 64  ;;  %p1746_p8 = scmp.lt.s32.totalorder %s1101_s21, %s1101_s21 }
 0x6cc   : > { %p1740_p6 = scmp.ne.s32.totalorder %s1101_s21, %s1739_s30  ;;  %p1747_p10 = scmp.lt.s32.totalorder %s1739_s30, %s1739_s30 }
 0x6ce   : > { %p1741_p5 = pnand %p1740_p6, %p1549_p4  ;;  %p1748_p11 = por %p1747_p10, %p1746_p8 }
 0x6d0   : > { %p1742_p7 = pneg %p1741_p5 }
 0x6d2   : > { %p1749_p13 = pnand %p1748_p11, %p1742_p7 }
 0x6d4   : > { %1752 = shalt.err (!%p1749_p13)
}
 0x6d5   : > { %s1753_s27 = scalar_lea.hbm %s2308_s10, 64 }
 0x6d6   : > { %p1754_p0 = scmp.ne.s32.totalorder %s2308_s10, %s1753_s27  ;;  %p1759_p2 = scmp.lt.u32.totalorder %s1753_s27, %s2308_s10 }
 0x6d8   : > { %p1755_p12 = pnand %p1754_p0, %p1549_p4 }
 0x6da   : > { %p1756_p1 = pneg %p1755_p12 }
 0x6dc   : > { %p1761_p9 = pnand %p1759_p2, %p1756_p1 }
 0x6de   : > { %1764 = shalt.err (!%p1761_p9)
}
 0x6df   : > { %1544 = dma.vmem_to_hbm [thread:$0]  (%p1549_p4), %s1101_s21, 64, %s2308_s10, [#allocation13]  }
 0x6e0   : > { %1786 = dma.done.wait (%p1549_p4), [#allocation10], 64  }
 0x6e1   : > { %1788 = vsyncadd (%p1549_p4), [#allocation10], 4294967232 }
 0x6e2   : > { %1790 = dma.done.wait (%p1549_p4), [#allocation13], 64  }
 0x6e3   : > { %1792 = vsyncadd (%p1549_p4), [#allocation13], 4294967232 }
 0x6e4 PF: > { %p26_p3 = scmp.ge.s32.totalorder %s1908_s6, 5   ;;  %s2314_s17 = smov %s1799_s18 }
 0x6e5   : > { %s2315_s18 = smov %s1803_s19  ;;  %s2316_s19 = smov %s1918_s23 }
 0x6e6   : > { %s2317_s20 = smov %s1908_s6  ;;  %28 = sbr.rel (!%p26_p3) target bundleno = 8 (0x8), region = 108 }
 0x6ed   :  { %1117 = vsyncpa [#allocation9], 1 }
 0x6ee   :  { %1119 = vsyncpa [#allocation9 + $0x1], 1 }
 0x6ef   :  { %1120 = vsyncpa [#allocation10], 1 }
 0x6f0   :  { %1122 = vsyncpa [#allocation10 + $0x1], 1 }
 0x6f1   :  { %1123 = vsyncpa [#allocation13], 1 }

</bundles_post_ra>
